<compile_context>
chip_gen: v7x
topology: tpu7x:2x2x1
jax: 0.10.0
libtpu: 0.0.40
codegen_flags: <defaults>
</compile_context>

<pallas_src>
import jax
import jax.numpy as jnp
from jax.experimental import pallas as pl
from jax.experimental.pallas import tpu as pltpu

LANE_WIDTH = 1024        # lane-dense slab width (multiple of 128 -> unmasked vst)
MAX_BLOCK_ROWS = 1024    # 4 MiB f32 output block, 8 MiB stacked input block per grid step
MIN_GRID_STEPS = 4       # keep >=2 grid steps so v7x's two TensorCores both participate


def _complex_norm_kernel(p_ref, o_ref):
    # p_ref: (2, block_rows, LANE_WIDTH) stacked [real; imag] f32 planes
    # o_ref: (block_rows, LANE_WIDTH) f32
    re = p_ref[0]
    im = p_ref[1]
    o_ref[...] = re * re + im * im


def _pick_block_rows(rows: int) -> int:
    """Rows per grid step: multiple of 8, <= MAX_BLOCK_ROWS, aim for >= MIN_GRID_STEPS steps."""
    if rows <= 8:
        return rows                              # tiny input: one full-extent block
    target = pl.cdiv(rows, MIN_GRID_STEPS)
    target = ((target + 7) // 8) * 8             # keep the sublane dim a multiple of 8
    return max(8, min(MAX_BLOCK_ROWS, target))


@jax.jit
def complex_norm(x: jnp.ndarray) -> jnp.ndarray:
    """Elementwise squared magnitude: x.real**2 + x.imag**2 -> float32."""
    orig_shape = x.shape
    n = x.size

    if n == 0:
        return jnp.zeros(orig_shape, jnp.float32)

    if not jnp.iscomplexobj(x):
        # Real input fast path (torch would reject non-complex; be lenient): imag == 0,
        # so y = x*x.  Pure elementwise square is already at the HBM roofline in XLA.
        xf = x.astype(jnp.float32)
        return xf * xf

    re = jnp.real(x).reshape(-1).astype(jnp.float32)
    im = jnp.imag(x).reshape(-1).astype(jnp.float32)

    rows = pl.cdiv(n, LANE_WIDTH)
    n_pad = rows * LANE_WIDTH
    padded = n_pad != n
    if padded:
        # <1024 zeros of filler (0**2 + 0**2 = 0); fuses into the plane-split pass under jit,
        # so this is not a standalone HBM copy.
        re = jnp.pad(re, (0, n_pad - n))
        im = jnp.pad(im, (0, n_pad - n))

    # One stacked operand -> the real/imag extraction is guaranteed to be a single fused
    # HBM pass over x (two separate operands can end up as two fusions = extra reads of x).
    planes = jnp.stack([re, im]).reshape(2, rows, LANE_WIDTH)

    block_rows = _pick_block_rows(rows)
    grid = (pl.cdiv(rows, block_rows),)          # ragged last block is masked by Pallas

    out2d = pl.pallas_call(
        _complex_norm_kernel,
        out_shape=jax.ShapeDtypeStruct((rows, LANE_WIDTH), jnp.float32),
        grid=grid,
        in_specs=[pl.BlockSpec((2, block_rows, LANE_WIDTH), lambda i: (0, i, 0))],
        out_specs=pl.BlockSpec((block_rows, LANE_WIDTH), lambda i: (i, 0)),
        compiler_params=pltpu.CompilerParams(
            dimension_semantics=("parallel",),
            vmem_limit_bytes=40 << 20,           # 24 MiB needed at the largest block size
        ),
    )(planes)

    out = out2d.reshape(-1)
    if padded:
        out = out[:n]                            # slice only when the tail forced padding
    return out.reshape(orig_shape)


if __name__ == "__main__":
    key = jax.random.PRNGKey(0)
    k_re, k_im = jax.random.split(key)
    shape = (2, 4, 16, 16)
    re = jax.random.normal(k_re, shape, dtype=jnp.float32)
    im = jax.random.normal(k_im, shape, dtype=jnp.float32)
    x = jax.lax.complex(re, im)                  # complex64 input, as the module expects

    y = jax.block_until_ready(complex_norm(x))
    y_ref = jnp.real(x) ** 2 + jnp.imag(x) ** 2
    assert y.shape == shape and y.dtype == jnp.float32
    assert jnp.allclose(y, y_ref, rtol=1e-6, atol=1e-6)

    # Also exercise the unaligned-tail (padded) path and the ragged multi-block grid path.
    for i, extra_shape in enumerate([(3, 5, 7), (5, 100, 33)]):
        k_re, k_im = jax.random.split(jax.random.PRNGKey(i + 1))
        re_e = jax.random.normal(k_re, extra_shape, dtype=jnp.float32)
        im_e = jax.random.normal(k_im, extra_shape, dtype=jnp.float32)
        xe = jax.lax.complex(re_e, im_e)
        ye = jax.block_until_ready(complex_norm(xe))
        ye_ref = jnp.real(xe) ** 2 + jnp.imag(xe) ** 2
        assert ye.shape == extra_shape and ye.dtype == jnp.float32
        assert jnp.allclose(ye, ye_ref, rtol=1e-6, atol=1e-6)

    print("KERNEL_OK")
</pallas_src>

<mosaic_0001>
module attributes {stable_mosaic.version = 11 : i64} {
  func.func @_complex_norm_kernel(%arg0: i32, %arg1: memref<2x2x1024xf32, #tpu.memory_space<vmem>>, %arg2: memref<2x1024xf32, #tpu.memory_space<vmem>>) attributes {dimension_semantics = [#tpu.dimension_semantics<parallel>], iteration_bounds = array<i64: 1>, scalar_prefetch = 0 : i64, scratch_operands = 0 : i64, tpu.core_type = #tpu.core_type<tc>, window_params = [{transform_indices = @transform_0, window_bounds = array<i64: 2, 2, 1024>}, {transform_indices = @transform_1, window_bounds = array<i64: 2, 1024>}]} {
    %c0 = arith.constant 0 : index
    %c0_0 = arith.constant 0 : index
    %c0_1 = arith.constant 0 : index
    %0 = vector.load %arg1[%c0, %c0_0, %c0_1] : memref<2x2x1024xf32, #tpu.memory_space<vmem>>, vector<1x2x1024xf32>
    %1 = vector.shape_cast %0 : vector<1x2x1024xf32> to vector<2x1024xf32>
    %c1 = arith.constant 1 : index
    %c0_2 = arith.constant 0 : index
    %c0_3 = arith.constant 0 : index
    %2 = vector.load %arg1[%c1, %c0_2, %c0_3] : memref<2x2x1024xf32, #tpu.memory_space<vmem>>, vector<1x2x1024xf32>
    %3 = vector.shape_cast %2 : vector<1x2x1024xf32> to vector<2x1024xf32>
    %4 = arith.mulf %1, %1 : vector<2x1024xf32>
    %5 = arith.mulf %3, %3 : vector<2x1024xf32>
    %6 = arith.addf %4, %5 : vector<2x1024xf32>
    %c0_4 = arith.constant 0 : index
    %c0_5 = arith.constant 0 : index
    %7 = vector.load %arg2[%c0_4, %c0_5] : memref<2x1024xf32, #tpu.memory_space<vmem>>, vector<2x1024xf32>
    tpu.vector_store %arg2[%c0_4, %c0_5], %6 {strides = array<i32>} : memref<2x1024xf32, #tpu.memory_space<vmem>>, vector<2x1024xf32>,
    return
  }
  func.func @transform_0(%arg0: i32) -> (i32, i32, i32) {
    %c0_i32 = arith.constant 0 : i32
    %c0_i32_0 = arith.constant 0 : i32
    %c0_i32_1 = arith.constant 0 : i32
    return %c0_i32, %arg0, %c0_i32_0 : i32, i32, i32
  }
  func.func @transform_1(%arg0: i32) -> (i32, i32) {
    %c0_i32 = arith.constant 0 : i32
    %c0_i32_0 = arith.constant 0 : i32
    return %arg0, %c0_i32 : i32, i32
  }
}

</mosaic_0001>

<bundles_post_ra>
// kernel: custom-call
= control target key start
LH: loop header
LB: loop body
LE: loop exit
PB: predicated region body
PF: predicated region fallthrough
CT: control target
= control target key end

     0   :  { %2 = vsyncpa [#allocation0], 0  ;;  %s61_s0 = inlined_call_operand.hbm [shape: c64[2,4,16,16], index: 0, kind: input, shape index: {}]   ;;  %s62_s1 = inlined_call_operand.vmem [shape: f32[2,4,16,16], index: 1, kind: output, shape index: {}]  }
   0x1   :  { %s3_s8 = sshll.u32 %s62_s1, 4  ;;  %s9_s11 = scalar_lea.hbm %s61_s0, 2048  ;;  %s4_s8 = int_to_ptr.vmem [resolvable:$true] %s3_s8 }
   0x2   :  { %p10_p0 = scmp.ne.s32.totalorder %s61_s0, %s9_s11  ;;  %s11_s16 = scalar_lea.hbm %s61_s0, 4096 }
   0x3   :  { %p12_p1 = scmp.lt.u32.totalorder %s11_s16, %s9_s11  ;;  %p13_p2 = scmp.lt.u32.totalorder %s9_s11, %s61_s0 }
   0x5   :  { %p14_p3 = por %p13_p2, %p12_p1 }
   0x7   :  { %p15_p4 = pnand %p14_p3, %p10_p0 }
   0x9   :  { %18 = shalt.err (!%p15_p4)  }
   0xa   :  { %s19_s1 = scalar_lea.vmem %s4_s8, 2048  ;;  %p24_p6 = scmp.lt.s32.totalorder %s4_s8, %s4_s8 }
   0xb   :  { %p20_p5 = scmp.ne.s32.totalorder %s4_s8, %s19_s1  ;;  %p25_p7 = scmp.lt.s32.totalorder %s19_s1, %s19_s1 }
   0xd   :  { %p26_p8 = por %p25_p7, %p24_p6 }
   0xf   :  { %p27_p9 = pnand %p26_p8, %p20_p5 }
  0x11   :  { %30 = shalt.err (!%p27_p9)  }
  0x12   :  { %6 = dma.hbm_to_vmem [thread:$0]  %s61_s0, 2048, %s4_s8, [#allocation0] }
  0x13   :  { %31 = dma.done.wait [#allocation0], 2048  }
  0x14   :  { %32 = vsyncadd [#allocation0], 4294965248 }
  0x15   :  { %8 = vsyncpa [#allocation0], 1 }

// kernel: custom-call.1
= control target key start
LH: loop header
LB: loop body
LE: loop exit
PB: predicated region body
PF: predicated region fallthrough
CT: control target
= control target key end

     0   :  { %s59_s0 = inlined_call_operand.hbm [shape: c64[2,4,16,16], index: 0, kind: input, shape index: {}]   ;;  %s60_s1 = inlined_call_operand.vmem [shape: f32[2,4,16,16], index: 1, kind: output, shape index: {}]  }
   0x1   :  { %s2_s8 = scalar_lea.hbm %s59_s0, 2048 }
   0x2   :  { %3 = vsyncpa [#allocation0], 0  ;;  %s4_s11 = sshll.u32 %s60_s1, 4  ;;  %s34_s14 = scalar_lea.hbm %s59_s0, 4096  ;;  %s5_s11 = int_to_ptr.vmem [resolvable:$true] %s4_s11 }
   0x3   :  { %p11_p0 = scmp.ne.s32.totalorder %s2_s8, %s34_s14  ;;  %p13_p1 = scmp.lt.u32.totalorder %s2_s8, %s59_s0 }
   0x4   :  { %p14_p2 = scmp.lt.u32.totalorder %s34_s14, %s34_s14  ;;  %p16_p4 = scmp.lt.u32.totalorder %s34_s14, %s2_s8 }
   0x6   :  { %p15_p3 = por %p14_p2, %p13_p1 }
   0x8   :  { %p17_p5 = por %p16_p4, %p15_p3 }
   0xa   :  { %p18_p6 = pnand %p17_p5, %p11_p0 }
   0xc   :  { %21 = shalt.err (!%p18_p6)  }
   0xd   :  { %s22_s17 = scalar_lea.vmem %s5_s11, 2048  ;;  %p27_p8 = scmp.lt.s32.totalorder %s5_s11, %s5_s11 }
   0xe   :  { %p23_p7 = scmp.ne.s32.totalorder %s5_s11, %s22_s17  ;;  %p28_p9 = scmp.lt.s32.totalorder %s22_s17, %s22_s17 }
  0x10   :  { %p29_p10 = por %p28_p9, %p27_p8 }
  0x12   :  { %p30_p11 = pnand %p29_p10, %p23_p7 }
  0x14   :  { %33 = shalt.err (!%p30_p11)  }
  0x15   :  { %7 = dma.hbm_to_vmem [thread:$0]  %s2_s8, 2048, %s5_s11, [#allocation0] }
  0x16   :  { %35 = dma.done.wait [#allocation0], 2048  }
  0x17   :  { %36 = vsyncadd [#allocation0], 4294965248 }
  0x18   :  { %9 = vsyncpa [#allocation0], 1 }

// kernel: complex_norm.1
= control target key start
LH: loop header
LB: loop body
LE: loop exit
PB: predicated region body
PF: predicated region fallthrough
CT: control target
= control target key end

     0   :  { %s55_s0 = inlined_call_operand.vmem [shape: f32[2,2,1024], index: 0, kind: input, shape index: {}]   ;;  %s56_s1 = inlined_call_operand.vmem [shape: f32[2,1024], index: 1, kind: output, shape index: {}]  }
   0x1   :  { %v8_v0 = vld [vmem:[%s55_s0] sm:$0xff]  ;;  %v25_v1 = vld [vmem:[%s55_s0 + $0x10] sm:$0xff]  ;;  %v9_v2 = vld [vmem:[%s55_s0 + $0x8] sm:$0xff] }
   0x2   :  { %v13_v3 = vmul.f32 %v8_v0, %v8_v0  ;;  %v15_v4 = vmul.f32 %v25_v1, %v25_v1  ;;  %v26_v5 = vld [vmem:[%s55_s0 + $0x18] sm:$0xff]  ;;  %v14_v6 = vmul.f32 %v9_v2, %v9_v2 }
   0x3   :  { %v16_v7 = vmul.f32 %v26_v5, %v26_v5 }
   0x4   :  { %v17_v8 = vadd.f32 %v15_v4, %v13_v3 }
   0x5   :  { %v18_v9 = vadd.f32 %v16_v7, %v14_v6 }
   0x6   :  { %19 = vst [vmem:[%s56_s1] sm:$0xff] %v17_v8 }
   0x7   :  { %20 = vst [vmem:[%s56_s1 + $0x8] sm:$0xff] %v18_v9 }

</bundles_post_ra>
